<compile_context>
chip_gen: v5e
topology: v5e:2x2
jax: 0.10.0
libtpu: 0.0.40
codegen_flags: <defaults>
</compile_context>

<pallas_src>
import functools

import jax
import jax.numpy as jnp
from jax.experimental import pallas as pl
from jax.experimental.pallas import tpu as pltpu


def _tree_sum(terms):
    """Pairwise (tree) reduction -> shorter dependence chain than a fold."""
    terms = list(terms)
    while len(terms) > 1:
        nxt = [terms[i] + terms[i + 1] for i in range(0, len(terms) - 1, 2)]
        if len(terms) % 2 == 1:
            nxt.append(terms[-1])
        terms = nxt
    return terms[0]


def _decoding_kernel(x_ref, w1_ref, m_ref, sc_ref, o_ref, s_scr, *, H, W, BB):
    """Fused 3-layer Conv3x3(+ReLU) decoder for a block of BB images.

    x_ref  : (BB, C, HW)  f32 VMEM -- NCHW input, spatial flattened.
    w1_ref : (16, C)      f32 VMEM -- layer-1 weights, row t = tap kh*3+kw
                                      (rows 9..15 are zero padding).
    m_ref  : (16, HW)     f32 VMEM -- per-tap "same"-padding validity masks
                                      (row 4 is all ones; rows 9..15 unused).
    sc_ref : (21,)        f32 SMEM -- [b1, w2[0..8], b2, w3[0..8], b3].
    o_ref  : (BB, 1, HW)  f32 VMEM -- final activation, spatial flattened.
    s_scr  : (BB, 16, HW) f32 VMEM scratch -- layer-1 per-tap channel sums.
    """
    HW = H * W

    mrows = [m_ref[t:t + 1, :] for t in range(9)]              # (1, HW) each

    def tap_shift(arr, t, scale=None):
        # result[b, p] = scale * arr[b, p + dh*W + dw], zero outside the image
        # ("same" zero padding); each sublane row is one image, so the lane
        # roll + per-image mask is exact.
        dh, dw = t // 3 - 1, t % 3 - 1
        d = dh * W + dw
        if d == 0:
            return arr if scale is None else scale * arr
        rolled = pltpu.roll(arr, (-d) % HW, 1)                  # XLU lane roll
        m = mrows[t] if scale is None else scale * mrows[t]     # (1, HW)
        return m * rolled                                       # bcast over BB

    # ---- layer 1: Conv2d(C -> 1, 3x3, pad 1) + ReLU -------------------------
    # Channel contraction first: one batched MXU matmul producing the nine
    # per-tap spatial maps for all BB images at once (N = HW lane-dense),
    # staged through VMEM scratch so each tap map is a (BB, HW) strided read.
    w1b = jnp.broadcast_to(w1_ref[...][None], (BB,) + w1_ref.shape)
    s_scr[...] = jnp.einsum('btc,bcn->btn', w1b, x_ref[...],
                            preferred_element_type=jnp.float32)  # (BB,16,HW)
    a = jnp.maximum(
        _tree_sum([tap_shift(s_scr[:, t, :], t) for t in range(9)]) + sc_ref[0],
        0.0)                                                     # (BB, HW)

    # ---- layers 2 & 3: Conv2d(1 -> 1, 3x3, pad 1) + ReLU (VPU/XLU only) -----
    off = 1
    for _layer in range(2):
        terms = [tap_shift(a, t, scale=sc_ref[off + t]) for t in range(9)]
        a = jnp.maximum(_tree_sum(terms) + sc_ref[off + 9], 0.0)
        off += 10

    o_ref[:, 0, :] = a.astype(o_ref.dtype)


@functools.partial(jax.jit, static_argnames=("batch_block",))
def decoding_forward(x_nchw, params, batch_block=None):
    """Forward pass of `Decoding` (c_out=1, n_layers=3).

    x_nchw: (B, C_in, H, W); params = ((w1,b1),(w2,b2),(w3,b3)) in PyTorch
    layouts w: (c_out, c_in, 3, 3), b: (c_out,).  Returns (B, 1, H, W).
    """
    (w1, b1), (w2, b2), (w3, b3) = params
    B, C, H, W = x_nchw.shape
    HW = H * W
    assert w1.shape == (1, C, 3, 3) and w2.shape == (1, 1, 3, 3)
    assert w3.shape == (1, 1, 3, 3)

    # Images per grid step: f32 sublanes are fully packed at BB = 8.
    BB = int(batch_block) if batch_block is not None else min(B, 8)
    steps = -(-B // BB)            # cdiv
    B_pad = steps * BB

    # Free row-major collapse NCHW -> (B, C, H*W); pad batch to a BB multiple.
    x_flat = x_nchw.reshape(B, C, HW).astype(jnp.float32)
    if B_pad != B:
        x_flat = jnp.pad(x_flat, ((0, B_pad - B), (0, 0), (0, 0)))

    # Layer-1 weight (1, C, 3, 3) -> (9, C) tap-major, padded to 16 rows so the
    # matmul operand is sublane-aligned.
    w1_k = jnp.transpose(w1.reshape(C, 9)).astype(jnp.float32)   # (9, C)
    w1_k = jnp.pad(w1_k, ((0, 16 - 9), (0, 0)))                  # (16, C)

    # Per-tap boundary masks (precomputed once, kept resident in VMEM):
    # row t is 1.0 where output position p has a valid in-image source p + d_t.
    pos = jnp.arange(HW, dtype=jnp.int32)
    hh, ww = pos // W, pos % W
    mask_rows = []
    for t in range(9):
        dh, dw = t // 3 - 1, t % 3 - 1
        valid = ((hh + dh >= 0) & (hh + dh < H) &
                 (ww + dw >= 0) & (ww + dw < W))
        mask_rows.append(valid.astype(jnp.float32))
    masks = jnp.stack(
        mask_rows + [jnp.zeros((HW,), jnp.float32)] * 7, axis=0)  # (16, HW)

    # All remaining parameters are scalars -> single SMEM table.
    scalars = jnp.concatenate([
        b1.reshape(1), w2.reshape(9), b2.reshape(1),
        w3.reshape(9), b3.reshape(1)]).astype(jnp.float32)        # (21,)

    out3 = pl.pallas_call(
        functools.partial(_decoding_kernel, H=H, W=W, BB=BB),
        out_shape=jax.ShapeDtypeStruct((B_pad, 1, HW), x_nchw.dtype),
        grid=(steps,),
        in_specs=[
            pl.BlockSpec((BB, C, HW), lambda i: (i, 0, 0)),
            pl.BlockSpec((16, C), lambda i: (0, 0)),
            pl.BlockSpec((16, HW), lambda i: (0, 0)),
            pl.BlockSpec(memory_space=pltpu.MemorySpace.SMEM),
        ],
        out_specs=pl.BlockSpec((BB, 1, HW), lambda i: (i, 0, 0)),
        scratch_shapes=[pltpu.VMEM((BB, 16, HW), jnp.float32)],
        compiler_params=pltpu.CompilerParams(
            dimension_semantics=("parallel",)),
    )(x_flat, w1_k, masks, scalars)

    return out3[:B].reshape(B, 1, H, W)                          # free reshape


def init_decoding_params(key, c_in=64, c_out=1, n_layers=3):
    """Deterministic params matching nn.Conv2d default-init shapes (OIHW)."""
    params = []
    cin = c_in
    for _ in range(n_layers):
        key, kw_key, kb_key = jax.random.split(key, 3)
        bound = 1.0 / float(cin * 9) ** 0.5
        w = jax.random.uniform(kw_key, (c_out, cin, 3, 3),
                               minval=-bound, maxval=bound, dtype=jnp.float32)
        b = jax.random.uniform(kb_key, (c_out,),
                               minval=-bound, maxval=bound, dtype=jnp.float32)
        params.append((w, b))
        cin = c_out
    return tuple(params)


def decoding_reference(x_nchw, params):
    """Pure-XLA reference (matches PyTorch Conv2d + ReLU semantics)."""
    a = x_nchw
    for (w, b) in params:
        a = jax.lax.conv_general_dilated(
            a, w, window_strides=(1, 1), padding=((1, 1), (1, 1)),
            dimension_numbers=("NCHW", "OIHW", "NCHW"),
            precision=jax.lax.Precision.HIGHEST)
        a = jnp.maximum(a + b.reshape(1, -1, 1, 1), 0.0)
    return a


if __name__ == "__main__":
    key = jax.random.PRNGKey(0)
    key, xkey = jax.random.split(key)

    B, C_IN, H, W = 2, 64, 16, 16
    x = jax.random.normal(xkey, (B, C_IN, H, W), dtype=jnp.float32)

    params = init_decoding_params(key, c_in=C_IN, c_out=1, n_layers=3)

    out = decoding_forward(x, params)
    out = jax.block_until_ready(out)

    assert out.shape == (B, 1, H, W), out.shape
    assert out.dtype == jnp.float32
    assert bool(jnp.all(out >= 0.0))          # ReLU output is non-negative

    ref = decoding_reference(x, params)
    max_err = float(jnp.max(jnp.abs(out - ref)))
    assert bool(jnp.allclose(out, ref, atol=2e-2, rtol=2e-2)), max_err

    print("KERNEL_OK")
</pallas_src>

<mosaic_0001>
module attributes {stable_mosaic.version = 11 : i64} {
  func.func @_decoding_kernel(%arg0: i32, %arg1: memref<2x64x256xf32, #tpu.memory_space<vmem>>, %arg2: memref<16x64xf32, #tpu.memory_space<vmem>>, %arg3: memref<16x256xf32, #tpu.memory_space<vmem>>, %arg4: memref<21xf32, #tpu.memory_space<smem>>, %arg5: memref<2x1x256xf32, #tpu.memory_space<vmem>>, %arg6: memref<2x16x256xf32, #tpu.memory_space<vmem>>) attributes {dimension_semantics = [#tpu.dimension_semantics<parallel>], iteration_bounds = array<i64: 1>, scalar_prefetch = 0 : i64, scratch_operands = 1 : i64, tpu.core_type = #tpu.core_type<tc>, window_params = [{transform_indices = @transform_0, window_bounds = array<i64: 2, 64, 256>}, {pipeline_mode = #tpu.pipeline_mode<synchronous>, transform_indices = @transform_1, window_bounds = array<i64: 16, 64>}, {pipeline_mode = #tpu.pipeline_mode<synchronous>, transform_indices = @transform_2, window_bounds = array<i64: 16, 256>}, {transform_indices = @transform_3, window_bounds = array<i64: 21>}, {transform_indices = @transform_4, window_bounds = array<i64: 2, 1, 256>}]} {
    %c0 = arith.constant 0 : index
    %c0_0 = arith.constant 0 : index
    %0 = vector.load %arg3[%c0, %c0_0] : memref<16x256xf32, #tpu.memory_space<vmem>>, vector<1x256xf32>
    %c1 = arith.constant 1 : index
    %c0_1 = arith.constant 0 : index
    %1 = vector.load %arg3[%c1, %c0_1] : memref<16x256xf32, #tpu.memory_space<vmem>>, vector<1x256xf32>
    %c2 = arith.constant 2 : index
    %c0_2 = arith.constant 0 : index
    %2 = vector.load %arg3[%c2, %c0_2] : memref<16x256xf32, #tpu.memory_space<vmem>>, vector<1x256xf32>
    %c3 = arith.constant 3 : index
    %c0_3 = arith.constant 0 : index
    %3 = vector.load %arg3[%c3, %c0_3] : memref<16x256xf32, #tpu.memory_space<vmem>>, vector<1x256xf32>
    %c5 = arith.constant 5 : index
    %c0_4 = arith.constant 0 : index
    %4 = vector.load %arg3[%c5, %c0_4] : memref<16x256xf32, #tpu.memory_space<vmem>>, vector<1x256xf32>
    %c6 = arith.constant 6 : index
    %c0_5 = arith.constant 0 : index
    %5 = vector.load %arg3[%c6, %c0_5] : memref<16x256xf32, #tpu.memory_space<vmem>>, vector<1x256xf32>
    %c7 = arith.constant 7 : index
    %c0_6 = arith.constant 0 : index
    %6 = vector.load %arg3[%c7, %c0_6] : memref<16x256xf32, #tpu.memory_space<vmem>>, vector<1x256xf32>
    %c8 = arith.constant 8 : index
    %c0_7 = arith.constant 0 : index
    %7 = vector.load %arg3[%c8, %c0_7] : memref<16x256xf32, #tpu.memory_space<vmem>>, vector<1x256xf32>
    %c0_8 = arith.constant 0 : index
    %c0_9 = arith.constant 0 : index
    %8 = vector.load %arg2[%c0_8, %c0_9] : memref<16x64xf32, #tpu.memory_space<vmem>>, vector<16x64xf32>
    %9 = vector.shape_cast %8 : vector<16x64xf32> to vector<1x16x64xf32>
    %10 = vector.shape_cast %9 : vector<1x16x64xf32> to vector<1x16x64xf32>
    %11 = vector.broadcast %10 : vector<1x16x64xf32> to vector<2x16x64xf32>
    %c0_10 = arith.constant 0 : index
    %c0_11 = arith.constant 0 : index
    %c0_12 = arith.constant 0 : index
    %12 = vector.load %arg1[%c0_10, %c0_11, %c0_12] : memref<2x64x256xf32, #tpu.memory_space<vmem>>, vector<2x64x256xf32>
    "tpu.trace_start"() <{level = 10 : i32, message = "btc,bcn->btn"}> : () -> ()
    %cst = arith.constant dense<0.000000e+00> : vector<2x16x256xf32>
    %13 = tpu.matmul %11, %12, %cst {dimension_numbers = #tpu.dot_dimension_numbers<[2], [1], [1], [2], [0, 0, 0, 1, 1, 2], [0], [0]>} : vector<2x16x64xf32>, vector<2x64x256xf32>, vector<2x16x256xf32> -> vector<2x16x256xf32>
    "tpu.trace_stop"() : () -> ()
    %c0_13 = arith.constant 0 : index
    %c0_14 = arith.constant 0 : index
    %c0_15 = arith.constant 0 : index
    %14 = vector.load %arg6[%c0_13, %c0_14, %c0_15] : memref<2x16x256xf32, #tpu.memory_space<vmem>>, vector<2x16x256xf32>
    tpu.vector_store %arg6[%c0_13, %c0_14, %c0_15], %13 {strides = array<i32>} : memref<2x16x256xf32, #tpu.memory_space<vmem>>, vector<2x16x256xf32>,
    %c0_16 = arith.constant 0 : index
    %c0_17 = arith.constant 0 : index
    %c0_18 = arith.constant 0 : index
    %15 = vector.load %arg6[%c0_16, %c0_17, %c0_18] : memref<2x16x256xf32, #tpu.memory_space<vmem>>, vector<2x1x256xf32>
    %16 = vector.shape_cast %15 : vector<2x1x256xf32> to vector<2x256xf32>
    %c17_i32 = arith.constant 17 : i32
    %17 = tpu.dynamic_rotate %16 by %c17_i32 dim 1 : vector<2x256xf32>, i32 -> vector<2x256xf32>
    %18 = vector.broadcast %0 : vector<1x256xf32> to vector<2x256xf32>
    %19 = arith.mulf %18, %17 : vector<2x256xf32>
    %c0_19 = arith.constant 0 : index
    %c1_20 = arith.constant 1 : index
    %c0_21 = arith.constant 0 : index
    %20 = vector.load %arg6[%c0_19, %c1_20, %c0_21] : memref<2x16x256xf32, #tpu.memory_space<vmem>>, vector<2x1x256xf32>
    %21 = vector.shape_cast %20 : vector<2x1x256xf32> to vector<2x256xf32>
    %c16_i32 = arith.constant 16 : i32
    %22 = tpu.dynamic_rotate %21 by %c16_i32 dim 1 : vector<2x256xf32>, i32 -> vector<2x256xf32>
    %23 = vector.broadcast %1 : vector<1x256xf32> to vector<2x256xf32>
    %24 = arith.mulf %23, %22 : vector<2x256xf32>
    %c0_22 = arith.constant 0 : index
    %c2_23 = arith.constant 2 : index
    %c0_24 = arith.constant 0 : index
    %25 = vector.load %arg6[%c0_22, %c2_23, %c0_24] : memref<2x16x256xf32, #tpu.memory_space<vmem>>, vector<2x1x256xf32>
    %26 = vector.shape_cast %25 : vector<2x1x256xf32> to vector<2x256xf32>
    %c15_i32 = arith.constant 15 : i32
    %27 = tpu.dynamic_rotate %26 by %c15_i32 dim 1 : vector<2x256xf32>, i32 -> vector<2x256xf32>
    %28 = vector.broadcast %2 : vector<1x256xf32> to vector<2x256xf32>
    %29 = arith.mulf %28, %27 : vector<2x256xf32>
    %c0_25 = arith.constant 0 : index
    %c3_26 = arith.constant 3 : index
    %c0_27 = arith.constant 0 : index
    %30 = vector.load %arg6[%c0_25, %c3_26, %c0_27] : memref<2x16x256xf32, #tpu.memory_space<vmem>>, vector<2x1x256xf32>
    %31 = vector.shape_cast %30 : vector<2x1x256xf32> to vector<2x256xf32>
    %c1_i32 = arith.constant 1 : i32
    %32 = tpu.dynamic_rotate %31 by %c1_i32 dim 1 : vector<2x256xf32>, i32 -> vector<2x256xf32>
    %33 = vector.broadcast %3 : vector<1x256xf32> to vector<2x256xf32>
    %34 = arith.mulf %33, %32 : vector<2x256xf32>
    %c0_28 = arith.constant 0 : index
    %c4 = arith.constant 4 : index
    %c0_29 = arith.constant 0 : index
    %35 = vector.load %arg6[%c0_28, %c4, %c0_29] : memref<2x16x256xf32, #tpu.memory_space<vmem>>, vector<2x1x256xf32>
    %36 = vector.shape_cast %35 : vector<2x1x256xf32> to vector<2x256xf32>
    %c0_30 = arith.constant 0 : index
    %c5_31 = arith.constant 5 : index
    %c0_32 = arith.constant 0 : index
    %37 = vector.load %arg6[%c0_30, %c5_31, %c0_32] : memref<2x16x256xf32, #tpu.memory_space<vmem>>, vector<2x1x256xf32>
    %38 = vector.shape_cast %37 : vector<2x1x256xf32> to vector<2x256xf32>
    %c255_i32 = arith.constant 255 : i32
    %39 = tpu.dynamic_rotate %38 by %c255_i32 dim 1 : vector<2x256xf32>, i32 -> vector<2x256xf32>
    %40 = vector.broadcast %4 : vector<1x256xf32> to vector<2x256xf32>
    %41 = arith.mulf %40, %39 : vector<2x256xf32>
    %c0_33 = arith.constant 0 : index
    %c6_34 = arith.constant 6 : index
    %c0_35 = arith.constant 0 : index
    %42 = vector.load %arg6[%c0_33, %c6_34, %c0_35] : memref<2x16x256xf32, #tpu.memory_space<vmem>>, vector<2x1x256xf32>
    %43 = vector.shape_cast %42 : vector<2x1x256xf32> to vector<2x256xf32>
    %c241_i32 = arith.constant 241 : i32
    %44 = tpu.dynamic_rotate %43 by %c241_i32 dim 1 : vector<2x256xf32>, i32 -> vector<2x256xf32>
    %45 = vector.broadcast %5 : vector<1x256xf32> to vector<2x256xf32>
    %46 = arith.mulf %45, %44 : vector<2x256xf32>
    %c0_36 = arith.constant 0 : index
    %c7_37 = arith.constant 7 : index
    %c0_38 = arith.constant 0 : index
    %47 = vector.load %arg6[%c0_36, %c7_37, %c0_38] : memref<2x16x256xf32, #tpu.memory_space<vmem>>, vector<2x1x256xf32>
    %48 = vector.shape_cast %47 : vector<2x1x256xf32> to vector<2x256xf32>
    %c240_i32 = arith.constant 240 : i32
    %49 = tpu.dynamic_rotate %48 by %c240_i32 dim 1 : vector<2x256xf32>, i32 -> vector<2x256xf32>
    %50 = vector.broadcast %6 : vector<1x256xf32> to vector<2x256xf32>
    %51 = arith.mulf %50, %49 : vector<2x256xf32>
    %c0_39 = arith.constant 0 : index
    %c8_40 = arith.constant 8 : index
    %c0_41 = arith.constant 0 : index
    %52 = vector.load %arg6[%c0_39, %c8_40, %c0_41] : memref<2x16x256xf32, #tpu.memory_space<vmem>>, vector<2x1x256xf32>
    %53 = vector.shape_cast %52 : vector<2x1x256xf32> to vector<2x256xf32>
    %c239_i32 = arith.constant 239 : i32
    %54 = tpu.dynamic_rotate %53 by %c239_i32 dim 1 : vector<2x256xf32>, i32 -> vector<2x256xf32>
    %55 = vector.broadcast %7 : vector<1x256xf32> to vector<2x256xf32>
    %56 = arith.mulf %55, %54 : vector<2x256xf32>
    %57 = arith.addf %19, %24 : vector<2x256xf32>
    %58 = arith.addf %29, %34 : vector<2x256xf32>
    %59 = arith.addf %36, %41 : vector<2x256xf32>
    %60 = arith.addf %46, %51 : vector<2x256xf32>
    %61 = arith.addf %57, %58 : vector<2x256xf32>
    %62 = arith.addf %59, %60 : vector<2x256xf32>
    %63 = arith.addf %61, %62 : vector<2x256xf32>
    %64 = arith.addf %63, %56 : vector<2x256xf32>
    %c0_42 = arith.constant 0 : index
    %65 = memref.load %arg4[%c0_42] : memref<21xf32, #tpu.memory_space<smem>>
    %66 = vector.broadcast %65 : f32 to vector<2x256xf32>
    %67 = arith.addf %64, %66 : vector<2x256xf32>
    %cst_43 = arith.constant 0.000000e+00 : f32
    %68 = vector.broadcast %cst_43 : f32 to vector<2x256xf32>
    %69 = arith.maximumf %67, %68 : vector<2x256xf32>
    %c1_44 = arith.constant 1 : index
    %70 = memref.load %arg4[%c1_44] : memref<21xf32, #tpu.memory_space<smem>>
    %c17_i32_45 = arith.constant 17 : i32
    %71 = tpu.dynamic_rotate %69 by %c17_i32_45 dim 1 : vector<2x256xf32>, i32 -> vector<2x256xf32>
    %72 = vector.broadcast %70 : f32 to vector<1x256xf32>
    %73 = arith.mulf %72, %0 : vector<1x256xf32>
    %74 = vector.broadcast %73 : vector<1x256xf32> to vector<2x256xf32>
    %75 = arith.mulf %74, %71 : vector<2x256xf32>
    %c2_46 = arith.constant 2 : index
    %76 = memref.load %arg4[%c2_46] : memref<21xf32, #tpu.memory_space<smem>>
    %c16_i32_47 = arith.constant 16 : i32
    %77 = tpu.dynamic_rotate %69 by %c16_i32_47 dim 1 : vector<2x256xf32>, i32 -> vector<2x256xf32>
    %78 = vector.broadcast %76 : f32 to vector<1x256xf32>
    %79 = arith.mulf %78, %1 : vector<1x256xf32>
    %80 = vector.broadcast %79 : vector<1x256xf32> to vector<2x256xf32>
    %81 = arith.mulf %80, %77 : vector<2x256xf32>
    %c3_48 = arith.constant 3 : index
    %82 = memref.load %arg4[%c3_48] : memref<21xf32, #tpu.memory_space<smem>>
    %c15_i32_49 = arith.constant 15 : i32
    %83 = tpu.dynamic_rotate %69 by %c15_i32_49 dim 1 : vector<2x256xf32>, i32 -> vector<2x256xf32>
    %84 = vector.broadcast %82 : f32 to vector<1x256xf32>
    %85 = arith.mulf %84, %2 : vector<1x256xf32>
    %86 = vector.broadcast %85 : vector<1x256xf32> to vector<2x256xf32>
    %87 = arith.mulf %86, %83 : vector<2x256xf32>
    %c4_50 = arith.constant 4 : index
    %88 = memref.load %arg4[%c4_50] : memref<21xf32, #tpu.memory_space<smem>>
    %c1_i32_51 = arith.constant 1 : i32
    %89 = tpu.dynamic_rotate %69 by %c1_i32_51 dim 1 : vector<2x256xf32>, i32 -> vector<2x256xf32>
    %90 = vector.broadcast %88 : f32 to vector<1x256xf32>
    %91 = arith.mulf %90, %3 : vector<1x256xf32>
    %92 = vector.broadcast %91 : vector<1x256xf32> to vector<2x256xf32>
    %93 = arith.mulf %92, %89 : vector<2x256xf32>
    %c5_52 = arith.constant 5 : index
    %94 = memref.load %arg4[%c5_52] : memref<21xf32, #tpu.memory_space<smem>>
    %95 = vector.broadcast %94 : f32 to vector<2x256xf32>
    %96 = arith.mulf %95, %69 : vector<2x256xf32>
    %c6_53 = arith.constant 6 : index
    %97 = memref.load %arg4[%c6_53] : memref<21xf32, #tpu.memory_space<smem>>
    %c255_i32_54 = arith.constant 255 : i32
    %98 = tpu.dynamic_rotate %69 by %c255_i32_54 dim 1 : vector<2x256xf32>, i32 -> vector<2x256xf32>
    %99 = vector.broadcast %97 : f32 to vector<1x256xf32>
    %100 = arith.mulf %99, %4 : vector<1x256xf32>
    %101 = vector.broadcast %100 : vector<1x256xf32> to vector<2x256xf32>
    %102 = arith.mulf %101, %98 : vector<2x256xf32>
    %c7_55 = arith.constant 7 : index
    %103 = memref.load %arg4[%c7_55] : memref<21xf32, #tpu.memory_space<smem>>
    %c241_i32_56 = arith.constant 241 : i32
    %104 = tpu.dynamic_rotate %69 by %c241_i32_56 dim 1 : vector<2x256xf32>, i32 -> vector<2x256xf32>
    %105 = vector.broadcast %103 : f32 to vector<1x256xf32>
    %106 = arith.mulf %105, %5 : vector<1x256xf32>
    %107 = vector.broadcast %106 : vector<1x256xf32> to vector<2x256xf32>
    %108 = arith.mulf %107, %104 : vector<2x256xf32>
    %c8_57 = arith.constant 8 : index
    %109 = memref.load %arg4[%c8_57] : memref<21xf32, #tpu.memory_space<smem>>
    %c240_i32_58 = arith.constant 240 : i32
    %110 = tpu.dynamic_rotate %69 by %c240_i32_58 dim 1 : vector<2x256xf32>, i32 -> vector<2x256xf32>
    %111 = vector.broadcast %109 : f32 to vector<1x256xf32>
    %112 = arith.mulf %111, %6 : vector<1x256xf32>
    %113 = vector.broadcast %112 : vector<1x256xf32> to vector<2x256xf32>
    %114 = arith.mulf %113, %110 : vector<2x256xf32>
    %c9 = arith.constant 9 : index
    %115 = memref.load %arg4[%c9] : memref<21xf32, #tpu.memory_space<smem>>
    %c239_i32_59 = arith.constant 239 : i32
    %116 = tpu.dynamic_rotate %69 by %c239_i32_59 dim 1 : vector<2x256xf32>, i32 -> vector<2x256xf32>
    %117 = vector.broadcast %115 : f32 to vector<1x256xf32>
    %118 = arith.mulf %117, %7 : vector<1x256xf32>
    %119 = vector.broadcast %118 : vector<1x256xf32> to vector<2x256xf32>
    %120 = arith.mulf %119, %116 : vector<2x256xf32>
    %121 = arith.addf %75, %81 : vector<2x256xf32>
    %122 = arith.addf %87, %93 : vector<2x256xf32>
    %123 = arith.addf %96, %102 : vector<2x256xf32>
    %124 = arith.addf %108, %114 : vector<2x256xf32>
    %125 = arith.addf %121, %122 : vector<2x256xf32>
    %126 = arith.addf %123, %124 : vector<2x256xf32>
    %127 = arith.addf %125, %126 : vector<2x256xf32>
    %128 = arith.addf %127, %120 : vector<2x256xf32>
    %c10 = arith.constant 10 : index
    %129 = memref.load %arg4[%c10] : memref<21xf32, #tpu.memory_space<smem>>
    %130 = vector.broadcast %129 : f32 to vector<2x256xf32>
    %131 = arith.addf %128, %130 : vector<2x256xf32>
    %cst_60 = arith.constant 0.000000e+00 : f32
    %132 = vector.broadcast %cst_60 : f32 to vector<2x256xf32>
    %133 = arith.maximumf %131, %132 : vector<2x256xf32>
    %c11 = arith.constant 11 : index
    %134 = memref.load %arg4[%c11] : memref<21xf32, #tpu.memory_space<smem>>
    %c17_i32_61 = arith.constant 17 : i32
    %135 = tpu.dynamic_rotate %133 by %c17_i32_61 dim 1 : vector<2x256xf32>, i32 -> vector<2x256xf32>
    %136 = vector.broadcast %134 : f32 to vector<1x256xf32>
    %137 = arith.mulf %136, %0 : vector<1x256xf32>
    %138 = vector.broadcast %137 : vector<1x256xf32> to vector<2x256xf32>
    %139 = arith.mulf %138, %135 : vector<2x256xf32>
    %c12 = arith.constant 12 : index
    %140 = memref.load %arg4[%c12] : memref<21xf32, #tpu.memory_space<smem>>
    %c16_i32_62 = arith.constant 16 : i32
    %141 = tpu.dynamic_rotate %133 by %c16_i32_62 dim 1 : vector<2x256xf32>, i32 -> vector<2x256xf32>
    %142 = vector.broadcast %140 : f32 to vector<1x256xf32>
    %143 = arith.mulf %142, %1 : vector<1x256xf32>
    %144 = vector.broadcast %143 : vector<1x256xf32> to vector<2x256xf32>
    %145 = arith.mulf %144, %141 : vector<2x256xf32>
    %c13 = arith.constant 13 : index
    %146 = memref.load %arg4[%c13] : memref<21xf32, #tpu.memory_space<smem>>
    %c15_i32_63 = arith.constant 15 : i32
    %147 = tpu.dynamic_rotate %133 by %c15_i32_63 dim 1 : vector<2x256xf32>, i32 -> vector<2x256xf32>
    %148 = vector.broadcast %146 : f32 to vector<1x256xf32>
    %149 = arith.mulf %148, %2 : vector<1x256xf32>
    %150 = vector.broadcast %149 : vector<1x256xf32> to vector<2x256xf32>
    %151 = arith.mulf %150, %147 : vector<2x256xf32>
    %c14 = arith.constant 14 : index
    %152 = memref.load %arg4[%c14] : memref<21xf32, #tpu.memory_space<smem>>
    %c1_i32_64 = arith.constant 1 : i32
    %153 = tpu.dynamic_rotate %133 by %c1_i32_64 dim 1 : vector<2x256xf32>, i32 -> vector<2x256xf32>
    %154 = vector.broadcast %152 : f32 to vector<1x256xf32>
    %155 = arith.mulf %154, %3 : vector<1x256xf32>
    %156 = vector.broadcast %155 : vector<1x256xf32> to vector<2x256xf32>
    %157 = arith.mulf %156, %153 : vector<2x256xf32>
    %c15 = arith.constant 15 : index
    %158 = memref.load %arg4[%c15] : memref<21xf32, #tpu.memory_space<smem>>
    %159 = vector.broadcast %158 : f32 to vector<2x256xf32>
    %160 = arith.mulf %159, %133 : vector<2x256xf32>
    %c16 = arith.constant 16 : index
    %161 = memref.load %arg4[%c16] : memref<21xf32, #tpu.memory_space<smem>>
    %c255_i32_65 = arith.constant 255 : i32
    %162 = tpu.dynamic_rotate %133 by %c255_i32_65 dim 1 : vector<2x256xf32>, i32 -> vector<2x256xf32>
    %163 = vector.broadcast %161 : f32 to vector<1x256xf32>
    %164 = arith.mulf %163, %4 : vector<1x256xf32>
    %165 = vector.broadcast %164 : vector<1x256xf32> to vector<2x256xf32>
    %166 = arith.mulf %165, %162 : vector<2x256xf32>
    %c17 = arith.constant 17 : index
    %167 = memref.load %arg4[%c17] : memref<21xf32, #tpu.memory_space<smem>>
    %c241_i32_66 = arith.constant 241 : i32
    %168 = tpu.dynamic_rotate %133 by %c241_i32_66 dim 1 : vector<2x256xf32>, i32 -> vector<2x256xf32>
    %169 = vector.broadcast %167 : f32 to vector<1x256xf32>
    %170 = arith.mulf %169, %5 : vector<1x256xf32>
    %171 = vector.broadcast %170 : vector<1x256xf32> to vector<2x256xf32>
    %172 = arith.mulf %171, %168 : vector<2x256xf32>
    %c18 = arith.constant 18 : index
    %173 = memref.load %arg4[%c18] : memref<21xf32, #tpu.memory_space<smem>>
    %c240_i32_67 = arith.constant 240 : i32
    %174 = tpu.dynamic_rotate %133 by %c240_i32_67 dim 1 : vector<2x256xf32>, i32 -> vector<2x256xf32>
    %175 = vector.broadcast %173 : f32 to vector<1x256xf32>
    %176 = arith.mulf %175, %6 : vector<1x256xf32>
    %177 = vector.broadcast %176 : vector<1x256xf32> to vector<2x256xf32>
    %178 = arith.mulf %177, %174 : vector<2x256xf32>
    %c19 = arith.constant 19 : index
    %179 = memref.load %arg4[%c19] : memref<21xf32, #tpu.memory_space<smem>>
    %c239_i32_68 = arith.constant 239 : i32
    %180 = tpu.dynamic_rotate %133 by %c239_i32_68 dim 1 : vector<2x256xf32>, i32 -> vector<2x256xf32>
    %181 = vector.broadcast %179 : f32 to vector<1x256xf32>
    %182 = arith.mulf %181, %7 : vector<1x256xf32>
    %183 = vector.broadcast %182 : vector<1x256xf32> to vector<2x256xf32>
    %184 = arith.mulf %183, %180 : vector<2x256xf32>
    %185 = arith.addf %139, %145 : vector<2x256xf32>
    %186 = arith.addf %151, %157 : vector<2x256xf32>
    %187 = arith.addf %160, %166 : vector<2x256xf32>
    %188 = arith.addf %172, %178 : vector<2x256xf32>
    %189 = arith.addf %185, %186 : vector<2x256xf32>
    %190 = arith.addf %187, %188 : vector<2x256xf32>
    %191 = arith.addf %189, %190 : vector<2x256xf32>
    %192 = arith.addf %191, %184 : vector<2x256xf32>
    %c20 = arith.constant 20 : index
    %193 = memref.load %arg4[%c20] : memref<21xf32, #tpu.memory_space<smem>>
    %194 = vector.broadcast %193 : f32 to vector<2x256xf32>
    %195 = arith.addf %192, %194 : vector<2x256xf32>
    %cst_69 = arith.constant 0.000000e+00 : f32
    %196 = vector.broadcast %cst_69 : f32 to vector<2x256xf32>
    %197 = arith.maximumf %195, %196 : vector<2x256xf32>
    %c0_70 = arith.constant 0 : index
    %c0_71 = arith.constant 0 : index
    %c0_72 = arith.constant 0 : index
    %198 = vector.load %arg5[%c0_70, %c0_71, %c0_72] : memref<2x1x256xf32, #tpu.memory_space<vmem>>, vector<2x1x256xf32>
    %199 = vector.shape_cast %198 : vector<2x1x256xf32> to vector<2x256xf32>
    %200 = vector.shape_cast %197 : vector<2x256xf32> to vector<2x1x256xf32>
    tpu.vector_store %arg5[%c0_70, %c0_71, %c0_72], %200 {strides = array<i32>} : memref<2x1x256xf32, #tpu.memory_space<vmem>>, vector<2x1x256xf32>,
    return
  }
  func.func @transform_0(%arg0: i32) -> (i32, i32, i32) {
    %c0_i32 = arith.constant 0 : i32
    %c0_i32_0 = arith.constant 0 : i32
    %c0_i32_1 = arith.constant 0 : i32
    return %arg0, %c0_i32, %c0_i32_0 : i32, i32, i32
  }
  func.func @transform_1(%arg0: i32) -> (i32, i32) {
    %c0_i32 = arith.constant 0 : i32
    %c0_i32_0 = arith.constant 0 : i32
    %c0_i32_1 = arith.constant 0 : i32
    return %c0_i32, %c0_i32_0 : i32, i32
  }
  func.func @transform_2(%arg0: i32) -> (i32, i32) {
    %c0_i32 = arith.constant 0 : i32
    %c0_i32_0 = arith.constant 0 : i32
    %c0_i32_1 = arith.constant 0 : i32
    return %c0_i32, %c0_i32_0 : i32, i32
  }
  func.func @transform_3(%arg0: i32) -> i32 {
    %c0_i32 = arith.constant 0 : i32
    %c0_i32_0 = arith.constant 0 : i32
    return %c0_i32 : i32
  }
  func.func @transform_4(%arg0: i32) -> (i32, i32, i32) {
    %c0_i32 = arith.constant 0 : i32
    %c0_i32_0 = arith.constant 0 : i32
    %c0_i32_1 = arith.constant 0 : i32
    return %arg0, %c0_i32, %c0_i32_0 : i32, i32, i32
  }
}

</mosaic_0001>

<bundles_post_ra>
// kernel: decoding_forward.1
= control target key start
LH: loop header
LB: loop body
LE: loop exit
PB: predicated region body
PF: predicated region fallthrough
CT: control target
= control target key end

     0   :  { %9 = vsyncpa [#allocation4], 0  ;;  %s841_s18 = smov [#allocation3]   ;;  %s1267_s0 = inlined_call_operand.vmem [shape: f32[2,64,256], index: 0, kind: input, shape index: {}]   ;;  %s1268_s1 = inlined_call_operand.vmem [shape: f32[16,64], index: 1, kind: input, shape index: {}]   ;;  %s1269_s2 = inlined_call_operand.vmem [shape: f32[16,256], index: 2, kind: input, shape index: {}]   ;;  %s1270_s3 = inlined_call_operand.vmem [shape: f32[21], index: 3, kind: input, shape index: {}]   ;;  %s1271_s4 = inlined_call_operand.vmem [shape: f32[2,1,256], index: 4, kind: output, shape index: {}]  }
   0x1   :  { %s21_s17 = sshll.u32 %s1270_s3, 4  ;;  %s22_s17 = int_to_ptr.vmem [resolvable:$true] %s21_s17 }
   0x2   :  { %24 = dma.vmem_to_smem %s22_s17, 16, %s841_s18, [#allocation4]  }
   0x3   :  { %839 = dma.done.wait [#allocation4], 16  }
   0x4   :  { %840 = vsyncadd [#allocation4], 4294967280 }
   0x5   :  { %29 = sfence }
   0x6   :  { %v77_v0 = vld [vmem:[%s1267_s0 + $0xf0] sm:$0xff]  ;;  %v78_v1 = vld [vmem:[%s1267_s0 + $0xf8] sm:$0xff]  ;;  %v75_v2 = vld [vmem:[%s1267_s0 + $0xe0] sm:$0xff]  ;;  %vm79_vm0 = vcmask 523264   ;;  %s844_s6 = smov 113   ;;  %s845_s7 = smov 16  }
   0x7   :  { %140 = vmatpush.msra.mxu2 %v77_v0  ;;  %163 = vmatpush.msra.mxu3 %v78_v1  ;;  %v76_v3 = vld [vmem:[%s1267_s0 + $0xe8] sm:$0xff]  ;;  %v73_v4 = vld [vmem:[%s1267_s0 + $0xd0] sm:$0xff]  ;;  %v74_v5 = vld [vmem:[%s1267_s0 + $0xd8] sm:$0xff]  ;;  %s846_s8 = smov 112   ;;  %s847_s9 = smov 1   ;;  %vm416_vm4 = vcmask 1041409  }
   0x8   :  { %v61_v6 = vld [vmem:[%s1267_s0 + $0x70] sm:$0xff]  ;;  %v62_v7 = vld [vmem:[%s1267_s0 + $0x78] sm:$0xff]  ;;  %v59_v8 = vld [vmem:[%s1267_s0 + $0x60] sm:$0xff]  ;;  %s848_s10 = smov 15   ;;  %s849_s11 = smov 111   ;;  %vm414_vm5 = vcmask 1040384  }
   0x9   :  { %141 = vmatpush.msra.mxu2 %v75_v2  ;;  %164 = vmatpush.msra.mxu3 %v76_v3  ;;  %v60_v9 = vld [vmem:[%s1267_s0 + $0x68] sm:$0xff]  ;;  %v71_v10 = vld [vmem:[%s1267_s0 + $0xc0] sm:$0xff]  ;;  %v57_v12 = vld [vmem:[%s1267_s0 + $0x50] sm:$0xff]  ;;  %s450_s27 = sld [smem:[#allocation3]] }
   0xa   :  { %94 = vmatpush.msra.mxu0 %v61_v6  ;;  %117 = vmatpush.msra.mxu1 %v62_v7  ;;  %v72_v11 = vld [vmem:[%s1267_s0 + $0xc8] sm:$0xff]  ;;  %v58_v13 = vld [vmem:[%s1267_s0 + $0x58] sm:$0xff]  ;;  %v69_v14 = vld [vmem:[%s1267_s0 + $0xb0] sm:$0xff]  ;;  %s800_s28 = sld [smem:[#allocation3 + $0x3]] }
   0xb   :  { %142 = vmatpush.msra.mxu2 %v73_v4  ;;  %165 = vmatpush.msra.mxu3 %v74_v5  ;;  %v70_v15 = vld [vmem:[%s1267_s0 + $0xb8] sm:$0xff]  ;;  %v55_v16 = vld [vmem:[%s1267_s0 + $0x40] sm:$0xff]  ;;  %v56_v17 = vld [vmem:[%s1267_s0 + $0x48] sm:$0xff]  ;;  %s799_s29 = sld [smem:[#allocation3 + $0x2]] }
   0xc   :  { %95 = vmatpush.msra.mxu0 %v59_v8  ;;  %118 = vmatpush.msra.mxu1 %v60_v9  ;;  %v67_v18 = vld [vmem:[%s1267_s0 + $0xa0] sm:$0xff]  ;;  %v68_v19 = vld [vmem:[%s1267_s0 + $0xa8] sm:$0xff]  ;;  %v53_v20 = vld [vmem:[%s1267_s0 + $0x30] sm:$0xff]  ;;  %s801_s30 = sld [smem:[#allocation3 + $0x4]] }
   0xd   :  { %143 = vmatpush.msra.mxu2 %v71_v10  ;;  %166 = vmatpush.msra.mxu3 %v72_v11  ;;  %v54_v21 = vld [vmem:[%s1267_s0 + $0x38] sm:$0xff]  ;;  %v65_v22 = vld [vmem:[%s1267_s0 + $0x90] sm:$0xff]  ;;  %v51_v24 = vld [vmem:[%s1267_s0 + $0x20] sm:$0xff]  ;;  %s804_s5 = sld [smem:[#allocation3 + $0x7]] }
   0xe   :  { %96 = vmatpush.msra.mxu0 %v57_v12  ;;  %119 = vmatpush.msra.mxu1 %v58_v13  ;;  %v66_v23 = vld [vmem:[%s1267_s0 + $0x98] sm:$0xff]  ;;  %v52_v25 = vld [vmem:[%s1267_s0 + $0x28] sm:$0xff]  ;;  %v63_v26 = vld [vmem:[%s1267_s0 + $0x80] sm:$0xff]  ;;  %v202_v12 = vlaneseq  ;;  %s803_s12 = sld [smem:[#allocation3 + $0x6]] }
   0xf   :  { %144 = vmatpush.msra.mxu2 %v69_v14  ;;  %167 = vmatpush.msra.mxu3 %v70_v15  ;;  %v64_v27 = vld [vmem:[%s1267_s0 + $0x88] sm:$0xff]  ;;  %v45_v28 = vld [vmem:[%s1268_s1] sm:$0xff]  ;;  %v49_v29 = vld [vmem:[%s1267_s0 + $0x10] sm:$0xff]  ;;  %s805_s13 = sld [smem:[#allocation3 + $0x8]] }
  0x10   :  { %97 = vmatpush.msra.mxu0 %v55_v16  ;;  %120 = vmatpush.msra.mxu1 %v56_v17  ;;  %v50_v30 = vld [vmem:[%s1267_s0 + $0x18] sm:$0xff]  ;;  %v47_v31 = vld [vmem:[%s1267_s0] sm:$0xff]  ;;  %v48_v32 = vld [vmem:[%s1267_s0 + $0x8] sm:$0xff]  ;;  %s842_s0 = smov 17   ;;  %v1009_v15 = vand.u32 127, %v202_v12  ;;  %s802_s14 = sld [smem:[#allocation3 + $0x5]] }
  0x11   :  { %145 = vmatpush.msra.mxu2 %v67_v18  ;;  %168 = vmatpush.msra.mxu3 %v68_v19  ;;  %v46_v33 = vld [vmem:[%s1268_s1 + $0x8] sm:$0xff]  ;;  %s843_s1 = smov 127   ;;  %s1131_s15 = sld [smem:[#allocation3 + $0x9]]  ;;  %vm774_vm11 = vcmp.lt.s32.totalorder %v202_v12, 256 }
  0x12   :  { %98 = vmatpush.msra.mxu0 %v53_v20  ;;  %121 = vmatpush.msra.mxu1 %v54_v21  ;;  %v1014_v16 = vld [vmem:[%s1269_s2 + $0x5] ss:$8 sm:$0x3]  ;;  %vm316_vm1 = vcmp.lt.s32.totalorder %v1009_v15, 127  ;;  %vm370_vm2 = vcmp.lt.s32.totalorder %v1009_v15, 112  ;;  %vm343_vm3 = vcmp.lt.s32.totalorder %v1009_v15, 113 }
  0x13   :  { %146 = vmatpush.msra.mxu2 %v65_v22  ;;  %169 = vmatpush.msra.mxu3 %v66_v23  ;;  %v321_v18 = vperm.slane %v1014_v16, 1  ;;  %v1023_v22 = vld [vmem:[%s1269_s2 + $0x7] ss:$8 sm:$0x3]  ;;  %vm204_vm6 = vcmp.lt.s32.totalorder %v1009_v15, 17  ;;  %vm231_vm7 = vcmp.lt.s32.totalorder %v1009_v15, 16 }
  0x14   :  { %99 = vmatpush.msra.mxu0 %v51_v24  ;;  %122 = vmatpush.msra.mxu1 %v52_v25  ;;  %v1028_v24 = vld [vmem:[%s1269_s2 + $0x6] ss:$8 sm:$0x3]  ;;  %v320_v25 = vperm.slane %v1014_v16, 0  ;;  %vm258_vm8 = vcmp.lt.s32.totalorder %v1009_v15, 15  ;;  %vm285_vm9 = vcmp.lt.s32.totalorder %v1009_v15, 1 }
  0x15   :  { %147 = vmatpush.msra.mxu2 %v63_v26  ;;  %170 = vmatpush.msra.mxu3 %v64_v27  ;;  %v375_v26 = vperm.slane %v1023_v22, 1  ;;  %vm397_vm10 = vcmp.lt.s32.totalorder %v1009_v15, 111  ;;  %s807_s16 = sld [smem:[#allocation3 + $0xa]] }
  0x16   :  { %794 = vmatmul.msk.f32.vlgmr.msra.gmra.mxu2 %vm79_vm0, %v45_v28  ;;  %796 = vmatmul.msk.f32.vlgmr.msra.gmra.mxu3 %vm79_vm0, %v45_v28  ;;  %s815_s17 = sld [smem:[#allocation3 + $0x12]] }
  0x17   :  { %100 = vmatpush.msra.mxu0 %v49_v29  ;;  %123 = vmatpush.msra.mxu1 %v50_v30  ;;  %v347_v29 = vperm.slane %v1028_v24, 0  ;;  %v348_v30 = vperm.slane %v1028_v24, 1  ;;  %s1210_s18 = sld [smem:[#allocation3 + $0xf]] }
  0x19   :  { %101 = vmatpush.msra.mxu0 %v47_v31  ;;  %124 = vmatpush.msra.mxu1 %v48_v32 }
  0x1a   :  { %790 = vmatmul.msk.f32.vlgmr.msra.gmra.mxu0 %vm79_vm0, %v45_v28  ;;  %792 = vmatmul.msk.f32.vlgmr.msra.gmra.mxu1 %vm79_vm0, %v45_v28 }
  0x1e   :  { %795 = vmatmul.msk.f32.gmra.mxu2 %vm79_vm0, %v46_v33  ;;  %797 = vmatmul.msk.f32.gmra.mxu3 %vm79_vm0, %v46_v33 }
  0x22   :  { %791 = vmatmul.msk.f32.gmra.mxu0 %vm79_vm0, %v46_v33  ;;  %793 = vmatmul.msk.f32.gmra.mxu1 %vm79_vm0, %v46_v33  ;;  %v374_v33 = vperm.slane %v1023_v22, 0 }
  0x97   :  { %v103_v34 = vpop.f32.mrf.mxu0  ;;  %v126_v35 = vpop.f32.mrf.mxu1 }
  0x98   :  { %178 = vst [vmem:[#allocation2] sm:$0xff] %v103_v34 }
  0x99   :  { %179 = vst [vmem:[#allocation2 + $0x8] sm:$0xff] %v126_v35  ;;  %v149_v36 = vpop.f32.mrf.mxu2  ;;  %v172_v37 = vpop.f32.mrf.mxu3 }
  0x9a   :  { %182 = vst [vmem:[#allocation2 + $0x20] sm:$0xff] %v149_v36 }
  0x9b   :  { %183 = vst [vmem:[#allocation2 + $0x28] sm:$0xff] %v172_v37 }
  0x9f   :  { %v106_v48 = vpop.f32.mrf.mxu0  ;;  %v129_v49 = vpop.f32.mrf.mxu1 }
  0xa0   :  { %v186_v38 = vld [vmem:[#allocation2] ss:$8 sm:$0x3]  ;;  %v215_v40 = vld [vmem:[#allocation2 + $0x1] ss:$8 sm:$0x3] }
  0xa1   :  { %191 = vst [vmem:[#allocation1] ss:$9 sm:$0xff] %v186_v38  ;;  %v242_v44 = vld [vmem:[#allocation2 + $0x2] ss:$8 sm:$0x3]  ;;  %v152_v50 = vpop.f32.mrf.mxu2  ;;  %v175_v51 = vpop.f32.mrf.mxu3 }
  0xa2   :  { %v188_v39 = vld [vmem:[#allocation2 + $0x20] ss:$8 sm:$0x3]  ;;  %v217_v43 = vld [vmem:[#allocation2 + $0x21] ss:$8 sm:$0x3] }
  0xa3   :  { %193 = vst [vmem:[#allocation1 + $0x1] ss:$9 sm:$0xff] %v188_v39  ;;  %v244_v47 = vld [vmem:[#allocation2 + $0x22] ss:$8 sm:$0x3] }
  0xa4   :  { %180 = vst [vmem:[#allocation2 + $0x10] sm:$0xff] %v106_v48  ;;  %v271_v54 = vld [vmem:[#allocation2 + $0x23] ss:$8 sm:$0x3] }
  0xa5   :  { %181 = vst [vmem:[#allocation2 + $0x18] sm:$0xff] %v129_v49  ;;  %v269_v55 = vld [vmem:[#allocation2 + $0x3] ss:$8 sm:$0x3] }
  0xa6   :  { %184 = vst [vmem:[#allocation2 + $0x30] sm:$0xff] %v152_v50  ;;  %v300_v56 = vld [vmem:[#allocation2 + $0x5] ss:$8 sm:$0x3] }
  0xa7   :  { %185 = vst [vmem:[#allocation2 + $0x38] sm:$0xff] %v175_v51  ;;  %v302_v59 = vld [vmem:[#allocation2 + $0x25] ss:$8 sm:$0x3] }
  0xa8   :  { %v327_v60 = vld [vmem:[#allocation2 + $0x6] ss:$8 sm:$0x3]  ;;  %v354_v0 = vld [vmem:[#allocation2 + $0x7] ss:$8 sm:$0x3] }
  0xa9   :  { %v329_v63 = vld [vmem:[#allocation2 + $0x26] ss:$8 sm:$0x3]  ;;  %v356_v3 = vld [vmem:[#allocation2 + $0x27] ss:$8 sm:$0x3] }
  0xaa   :  { %v194_v41 = vld [vmem:[#allocation1] sm:$0xff]  ;;  %v195_v42 = vld [vmem:[#allocation1 + $0x9] sm:$0xff] }
  0xab   :  { %220 = vst [vmem:[#allocation1] ss:$9 sm:$0xff] %v215_v40  ;;  %200 = vrot.lane.b32.xlu1 %v195_v42, %s842_s0  ;;  %198 = vrot.lane.b32.xlu0 %v194_v41, %s842_s0  ;;  %v296_v48 = vld [vmem:[#allocation2 + $0x4] ss:$8 sm:$0x3] }
  0xac   :  { %222 = vst [vmem:[#allocation1 + $0x1] ss:$9 sm:$0xff] %v217_v43  ;;  %v381_v4 = vld [vmem:[#allocation2 + $0x10] ss:$8 sm:$0x3] }
  0xad   :  { %v1052_v51 = vld [vmem:[%s1269_s2] ss:$8 sm:$0x3] }
  0xae   :  { %v383_v5 = vld [vmem:[#allocation2 + $0x30] ss:$8 sm:$0x3] }
  0xb3   :  { %v223_v45 = vld [vmem:[#allocation1] sm:$0xff]  ;;  %v224_v46 = vld [vmem:[#allocation1 + $0x9] sm:$0xff] }
  0xb4   :  { %247 = vst [vmem:[#allocation1] ss:$9 sm:$0xff] %v242_v44 }
  0xb5   :  { %249 = vst [vmem:[#allocation1 + $0x1] ss:$9 sm:$0xff] %v244_v47 }
  0xbc   :  { %v250_v52 = vld [vmem:[#allocation1] sm:$0xff]  ;;  %v251_v53 = vld [vmem:[#allocation1 + $0x9] sm:$0xff] }
  0xbd   :  { %276 = vst [vmem:[#allocation1 + $0x1] ss:$9 sm:$0xff] %v271_v54 }
  0xbe   :  { %274 = vst [vmem:[#allocation1] ss:$9 sm:$0xff] %v269_v55 }
  0xc5   :  { %v277_v57 = vld [vmem:[#allocation1] sm:$0xff]  ;;  %v278_v58 = vld [vmem:[#allocation1 + $0x9] sm:$0xff] }
  0xc6   :  { %305 = vst [vmem:[#allocation1] ss:$9 sm:$0xff] %v300_v56 }
  0xc7   :  { %307 = vst [vmem:[#allocation1 + $0x1] ss:$9 sm:$0xff] %v302_v59  ;;  %v1060_v59 = vld [vmem:[%s1269_s2 + $0x1] ss:$8 sm:$0x3] }
  0xce   :  { %v308_v61 = vld [vmem:[#allocation1] sm:$0xff]  ;;  %v309_v62 = vld [vmem:[#allocation1 + $0x9] sm:$0xff] }
  0xcf   :  { %312 = vrot.lane.b32.xlu0 %v308_v61, %s843_s1  ;;  %332 = vst [vmem:[#allocation1] ss:$9 sm:$0xff] %v327_v60 }
  0xd0   :  { %334 = vst [vmem:[#allocation1 + $0x1] ss:$9 sm:$0xff] %v329_v63 }
  0xd7   :  { %314 = vrot.lane.b32.xlu0 %v309_v62, %s843_s1  ;;  %v335_v1 = vld [vmem:[#allocation1] sm:$0xff]  ;;  %v336_v2 = vld [vmem:[#allocation1 + $0x9] sm:$0xff]  ;;  %v208_v62 = vperm.slane %v1052_v51, 0 }
  0xd8   :  { %339 = vrot.lane.b32.xlu1 %v335_v1, %s844_s6  ;;  %359 = vst [vmem:[#allocation1] ss:$9 sm:$0xff] %v354_v0  ;;  %v1067_v0 = vld [vmem:[%s1269_s2 + $0x2] ss:$8 sm:$0x3]  ;;  %v209_v1 = vperm.slane %v1052_v51, 1 }
  0xd9   :  { %361 = vst [vmem:[#allocation1 + $0x1] ss:$9 sm:$0xff] %v356_v3  ;;  %v1073_v3 = vld [vmem:[%s1269_s2 + $0x3] ss:$8 sm:$0x3] }
  0xdf   :  { %229 = vrot.lane.b32.xlu0 %v224_v46, %s845_s7 }
  0xe0   :  { %341 = vrot.lane.b32.xlu1 %v336_v2, %s844_s6  ;;  %v362_v6 = vld [vmem:[#allocation1] sm:$0xff]  ;;  %v363_v7 = vld [vmem:[#allocation1 + $0x9] sm:$0xff] }
  0xe1   :  { %366 = vrot.lane.b32.xlu2 %v362_v6, %s846_s8  ;;  %386 = vst [vmem:[#allocation1] ss:$9 sm:$0xff] %v381_v4  ;;  %v236_v6 = vperm.slane %v1060_v59, 1 }
  0xe2   :  { %388 = vst [vmem:[#allocation1 + $0x1] ss:$9 sm:$0xff] %v383_v5  ;;  %v235_v5 = vperm.slane %v1060_v59, 0 }
  0xe7   :  { %281 = vrot.lane.b32.xlu0 %v277_v57, %s847_s9 }
  0xe8   :  { %254 = vrot.lane.b32.xlu1 %v250_v52, %s848_s10 }
  0xe9   :  { %368 = vrot.lane.b32.xlu2 %v363_v7, %s846_s8  ;;  %v390_v8 = vld [vmem:[#allocation1 + $0x9] sm:$0xff]  ;;  %v389_v9 = vld [vmem:[#allocation1] sm:$0xff] }
  0xef   :  { %395 = vrot.lane.b32.xlu0 %v390_v8, %s849_s11 }
  0xf0   :  { %283 = vrot.lane.b32.xlu1 %v278_v58, %s847_s9 }
  0xf1   :  { %227 = vrot.lane.b32.xlu2 %v223_v45, %s845_s7 }
  0xf9   :  { %256 = vrot.lane.b32.xlu2 %v251_v53, %s848_s10  ;;  %v298_v53 = vld [vmem:[#allocation2 + $0x24] ss:$8 sm:$0x3] }
 0x101   :  { %393 = vrot.lane.b32.xlu2 %v389_v9, %s849_s11 }
 0x11d   :  { %v1004_v10 = vpop.permute.xlu0 %198  ;;  %v1006_v14 = vpop.permute.xlu1 %200 }
 0x11e   :  { %v205_v4 = vsel %vm204_vm6, %v1004_v10, %v1006_v14  ;;  %v206_v7 = vsel %vm204_vm6, %v1006_v14, %v1004_v10 }
 0x13b   :  { %v367_v11 = vpop.permute.xlu2 %366 }
 0x141   :  { %v313_v13 = vpop.permute.xlu0 %312 }
 0x143   :  { %v369_v17 = vpop.permute.xlu2 %368 }
 0x144   :  { %v372_v31 = vsel %vm370_vm2, %v369_v17, %v367_v11  ;;  %v371_v37 = vsel %vm370_vm2, %v367_v11, %v369_v17  ;;  %v262_v11 = vperm.slane %v1067_v0, 0  ;;  %v289_v17 = vperm.slane %v1073_v3, 0 }
 0x145   :  { %v379_v40 = vmul.f32 %v375_v26, %v372_v31  ;;  %v378_v44 = vmul.f32 %v374_v33, %v371_v37  ;;  %v213_v26 = vmul.f32 %v209_v1, %v205_v4 }
 0x149   :  { %v315_v19 = vpop.permute.xlu0 %314 }
 0x14a   :  { %v318_v20 = vsel %vm316_vm1, %v315_v19, %v313_v13  ;;  %v340_v21 = vpop.permute.xlu1 %339  ;;  %v317_v27 = vsel %vm316_vm1, %v313_v13, %v315_v19  ;;  %v263_v13 = vperm.slane %v1067_v0, 1  ;;  %v212_v19 = vmul.f32 %v208_v62, %v206_v7 }
 0x14b   :  { %v325_v23 = vmul.f32 %v321_v18, %v318_v20  ;;  %v324_v34 = vmul.f32 %v320_v25, %v317_v27  ;;  %v228_v35 = vpop.permute.xlu2 %227  ;;  %v290_v18 = vperm.slane %v1073_v3, 1  ;;  %v1102_v25 = vld [vmem:[%s1269_s2 + $0x10] ss:$8 sm:$0x3]  ;;  %s798_s2 = sld [smem:[#allocation3 + $0x1]]  ;;  %v495_v7 = vstv %s800_s28 }
 0x14d   :  { %v413_v28 = vrot.slane %v325_v23, 7 }
 0x14f   :  { %v417_v41 = vsel %vm416_vm4, %v324_v34, %v413_v28  ;;  %v415_v45 = vsel %vm414_vm5, %v324_v34, %v413_v28  ;;  %v401_v34 = vperm.slane %v1102_v25, 0 }
 0x150   :  { %v418_v47 = vrot.slane %v417_v41, 1  ;;  %v421_v52 = vadd.f32 %v415_v45, %v296_v48 }
 0x151   :  { %v230_v32 = vpop.permute.xlu0 %229 }
 0x152   :  { %v342_v36 = vpop.permute.xlu1 %341  ;;  %v422_v58 = vadd.f32 %v418_v47, %v298_v53  ;;  %v232_v8 = vsel %vm231_vm7, %v228_v35, %v230_v32  ;;  %v233_v9 = vsel %vm231_vm7, %v230_v32, %v228_v35  ;;  %v402_v35 = vperm.slane %v1102_v25, 1 }
 0x153   :  { %v344_v38 = vsel %vm343_vm3, %v340_v21, %v342_v36  ;;  %v345_v39 = vsel %vm343_vm3, %v342_v36, %v340_v21  ;;  %v257_v63 = vpop.permute.xlu2 %256  ;;  %v239_v20 = vmul.f32 %v235_v5, %v233_v9  ;;  %v240_v21 = vmul.f32 %v236_v6, %v232_v8 }
 0x154   :  { %v351_v42 = vmul.f32 %v347_v29, %v344_v38  ;;  %v352_v43 = vmul.f32 %v348_v30, %v345_v39  ;;  %v463_v6 = vstv %s798_s2  ;;  %v479_v8 = vstv %s799_s29 }
 0x155   :  { %v407_v36 = vadd.f32 %v239_v20, %v212_v19  ;;  %v408_v37 = vadd.f32 %v240_v21, %v213_v26  ;;  %v480_v19 = vmul.f32 %v1060_v59, %v479_v8  ;;  %v521_v20 = vstv %s802_s14 }
 0x156   :  { %v424_v46 = vadd.f32 %v379_v40, %v352_v43  ;;  %v423_v49 = vadd.f32 %v378_v44, %v351_v42 }
 0x158   :  { %v429_v50 = vrot.slane %v424_v46, 7 }
 0x159   :  { %v282_v56 = vpop.permute.xlu0 %281 }
 0x15a   :  { %v430_v54 = vsel %vm414_vm5, %v423_v49, %v429_v50  ;;  %v431_v55 = vsel %vm416_vm4, %v423_v49, %v429_v50  ;;  %v255_v57 = vpop.permute.xlu1 %254 }
 0x15b   :  { %v432_v60 = vrot.slane %v431_v55, 1  ;;  %v435_v61 = vadd.f32 %v430_v54, %v421_v52  ;;  %v259_v10 = vsel %vm258_vm8, %v255_v57, %v257_v63  ;;  %v260_v14 = vsel %vm258_vm8, %v257_v63, %v255_v57  ;;  %v394_v38 = vpop.permute.xlu2 %393 }
 0x15c   :  { %v266_v29 = vmul.f32 %v262_v11, %v260_v14  ;;  %v267_v30 = vmul.f32 %v263_v13, %v259_v10  ;;  %v451_v52 = vstv %s450_s27  ;;  %v511_v11 = vstv %s801_s30 }
 0x15d   :  { %v436_v2 = vadd.f32 %v432_v60, %v422_v58  ;;  %439 = vst [vmem:[#allocation1] ss:$9 sm:$0xff] %v435_v61  ;;  %v547_v13 = vstv %s804_s5  ;;  %v563_v10 = vstv %s805_s13  ;;  %v496_v14 = vmul.f32 %v1067_v0, %v495_v7 }
 0x15e   :  { %v548_v26 = vmul.f32 %v1028_v24, %v547_v13 }
 0x15f   :  { %441 = vst [vmem:[#allocation1 + $0x1] ss:$9 sm:$0xff] %v436_v2 }
 0x161   :  { %v396_v33 = vpop.permute.xlu0 %395 }
 0x162   :  { %v284_v23 = vpop.permute.xlu1 %283  ;;  %v398_v41 = vsel %vm397_vm10, %v394_v38, %v396_v33  ;;  %v399_v42 = vsel %vm397_vm10, %v396_v33, %v394_v38 }
 0x163   :  { %v286_v27 = vsel %vm285_vm9, %v282_v56, %v284_v23  ;;  %v287_v28 = vsel %vm285_vm9, %v284_v23, %v282_v56  ;;  %v405_v47 = vmul.f32 %v401_v34, %v398_v41  ;;  %v406_v48 = vmul.f32 %v402_v35, %v399_v42 }
 0x164   :  { %v293_v31 = vmul.f32 %v289_v17, %v287_v28  ;;  %v294_v32 = vmul.f32 %v290_v18, %v286_v27  ;;  %v464_v17 = vmul.f32 %v463_v6, %v1052_v51  ;;  %v531_v18 = vstv %s803_s12 }
 0x165   :  { %v512_v23 = vmul.f32 %v1073_v3, %v511_v11  ;;  %v532_v27 = vmul.f32 %v1014_v16, %v531_v18  ;;  %v564_v28 = vmul.f32 %v1023_v22, %v563_v10  ;;  %v498_v34 = vperm.slane %v496_v14, 0 }
 0x166   :  { %v409_v39 = vadd.f32 %v293_v31, %v266_v29  ;;  %v410_v40 = vadd.f32 %v294_v32, %v267_v30  ;;  %v442_v45 = vld [vmem:[#allocation1] sm:$0xff]  ;;  %v443_v46 = vld [vmem:[#allocation1 + $0x9] sm:$0xff]  ;;  %v466_v29 = vperm.slane %v464_v17, 0  ;;  %v467_v30 = vperm.slane %v464_v17, 1 }
 0x167   :  { %v499_v35 = vperm.slane %v496_v14, 1  ;;  %v514_v38 = vperm.slane %v512_v23, 0  ;;  %v551_v41 = vperm.slane %v548_v26, 1  ;;  %v534_v42 = vperm.slane %v532_v27, 0 }
 0x168   :  { %v425_v43 = vadd.f32 %v409_v39, %v407_v36  ;;  %v426_v44 = vadd.f32 %v410_v40, %v408_v37  ;;  %v482_v36 = vperm.slane %v480_v19, 0  ;;  %v483_v37 = vperm.slane %v480_v19, 1 }
 0x169   :  { %v515_v39 = vperm.slane %v512_v23, 1  ;;  %v550_v40 = vperm.slane %v548_v26, 0 }
 0x16a   :  { %v446_v49 = vadd.f32 %v442_v45, %v425_v43  ;;  %v447_v50 = vadd.f32 %v443_v46, %v426_v44  ;;  %v535_v43 = vperm.slane %v532_v27, 1  ;;  %v566_v44 = vperm.slane %v564_v28, 0 }
 0x16b   :  { %v579_v45 = vstv %s1131_s15 }
 0x16c   :  { %v448_v53 = vadd.f32 %v446_v49, %v405_v47  ;;  %v449_v54 = vadd.f32 %v447_v50, %v406_v48  ;;  %v567_v50 = vperm.slane %v564_v28, 1 }
 0x16e   :  { %v452_v55 = vadd.f32 %v451_v52, %v448_v53  ;;  %v453_v56 = vadd.f32 %v451_v52, %v449_v54 }
 0x170   :  { %v454_v57 = vmax.f32 %v452_v55, 0.0  ;;  %v455_v58 = vmax.f32 %v453_v56, 0.0 }
 0x172   :  { %459 = vrot.lane.b32.xlu2 %v455_v58, %s842_s0  ;;  %473 = vrot.lane.b32.xlu0 %v454_v57, %s845_s7  ;;  %v523_v31 = vmul.f32 %v521_v20, %v455_v58  ;;  %v522_v33 = vmul.f32 %v521_v20, %v454_v57 }
 0x173   :  { %457 = vrot.lane.b32.xlu1 %v454_v57, %s842_s0 }
 0x17a   :  { %489 = vrot.lane.b32.xlu2 %v454_v57, %s848_s10  ;;  %491 = vrot.lane.b32.xlu0 %v455_v58, %s848_s10 }
 0x17b   :  { %475 = vrot.lane.b32.xlu1 %v455_v58, %s845_s7 }
 0x182   :  { %507 = vrot.lane.b32.xlu2 %v455_v58, %s847_s9  ;;  %525 = vrot.lane.b32.xlu0 %v454_v57, %s843_s1 }
 0x183   :  { %505 = vrot.lane.b32.xlu1 %v454_v57, %s847_s9 }
 0x18a   :  { %541 = vrot.lane.b32.xlu2 %v454_v57, %s844_s6  ;;  %543 = vrot.lane.b32.xlu0 %v455_v58, %s844_s6 }
 0x18b   :  { %527 = vrot.lane.b32.xlu1 %v455_v58, %s843_s1 }
 0x192   :  { %559 = vrot.lane.b32.xlu2 %v455_v58, %s846_s8  ;;  %573 = vrot.lane.b32.xlu0 %v454_v57, %s849_s11 }
 0x193   :  { %557 = vrot.lane.b32.xlu1 %v454_v57, %s846_s8 }
 0x19b   :  { %575 = vrot.lane.b32.xlu1 %v455_v58, %s849_s11 }
 0x1cc   :  { %v460_v60 = vpop.permute.xlu2 %459 }
 0x1d4   :  { %v490_v63 = vpop.permute.xlu2 %489 }
 0x1dc   :  { %v508_v4 = vpop.permute.xlu2 %507 }
 0x1e4   :  { %v474_v61 = vpop.permute.xlu0 %473  ;;  %v542_v21 = vpop.permute.xlu2 %541 }
 0x1e5   :  { %v458_v62 = vpop.permute.xlu1 %457 }
 0x1e6   :  { %v461_v46 = vsel %vm204_vm6, %v458_v62, %v460_v60  ;;  %v462_v56 = vsel %vm204_vm6, %v460_v60, %v458_v62 }
 0x1e7   :  { %v470_v20 = vmul.f32 %v466_v29, %v462_v56 }
 0x1ec   :  { %v492_v1 = vpop.permute.xlu0 %491  ;;  %v560_v7 = vpop.permute.xlu2 %559 }
 0x1ed   :  { %v476_v2 = vpop.permute.xlu1 %475  ;;  %v493_v52 = vsel %vm258_vm8, %v490_v63, %v492_v1  ;;  %v494_v53 = vsel %vm258_vm8, %v492_v1, %v490_v63 }
 0x1ee   :  { %v477_v57 = vsel %vm231_vm7, %v474_v61, %v476_v2  ;;  %v478_v58 = vsel %vm231_vm7, %v476_v2, %v474_v61  ;;  %v502_v8 = vmul.f32 %v498_v34, %v494_v53 }
 0x1ef   :  { %v486_v13 = vmul.f32 %v482_v36, %v478_v58  ;;  %v487_v17 = vmul.f32 %v483_v37, %v477_v57 }
 0x1f1   :  { %v588_v37 = vadd.f32 %v486_v13, %v470_v20  ;;  %v675_v20 = vstv %s1210_s18 }
 0x1f4   :  { %v526_v9 = vpop.permute.xlu0 %525 }
 0x1f5   :  { %v506_v5 = vpop.permute.xlu1 %505 }
 0x1f6   :  { %v509_v47 = vsel %vm285_vm9, %v506_v5, %v508_v4  ;;  %v510_v48 = vsel %vm285_vm9, %v508_v4, %v506_v5  ;;  %v580_v4 = vmul.f32 %v1102_v25, %v579_v45 }
 0x1f7   :  { %v518_v5 = vmul.f32 %v514_v38, %v510_v48  ;;  %v519_v6 = vmul.f32 %v515_v39, %v509_v47  ;;  %v605_v47 = vstv %s807_s16 }
 0x1f8   :  { %v583_v36 = vperm.slane %v580_v4, 1 }
 0x1f9   :  { %v590_v23 = vadd.f32 %v518_v5, %v502_v8 }
 0x1fc   :  { %v544_v49 = vpop.permute.xlu0 %543 }
 0x1fd   :  { %v528_v32 = vpop.permute.xlu1 %527  ;;  %v545_v63 = vsel %vm343_vm3, %v542_v21, %v544_v49  ;;  %v546_v1 = vsel %vm343_vm3, %v544_v49, %v542_v21  ;;  %v471_v21 = vmul.f32 %v467_v30, %v461_v46 }
 0x1fe   :  { %v529_v54 = vsel %vm316_vm1, %v526_v9, %v528_v32  ;;  %v530_v55 = vsel %vm316_vm1, %v528_v32, %v526_v9  ;;  %v503_v9 = vmul.f32 %v499_v35, %v493_v52  ;;  %v554_v18 = vmul.f32 %v550_v40, %v545_v63 }
 0x1ff   :  { %v538_v60 = vmul.f32 %v534_v42, %v529_v54  ;;  %v539_v62 = vmul.f32 %v535_v43, %v530_v55  ;;  %v555_v10 = vmul.f32 %v551_v41, %v546_v1  ;;  %v582_v35 = vperm.slane %v580_v4, 0 }
 0x200   :  { %v591_v26 = vadd.f32 %v519_v6, %v503_v9  ;;  %v589_v38 = vadd.f32 %v487_v17, %v471_v21  ;;  %v596_v43 = vadd.f32 %v590_v23, %v588_v37 }
 0x201   :  { %v592_v27 = vadd.f32 %v538_v60, %v522_v33  ;;  %v593_v28 = vadd.f32 %v539_v62, %v523_v31 }
 0x202   :  { %v597_v40 = vadd.f32 %v591_v26, %v589_v38 }
 0x204   :  { %v574_v41 = vpop.permute.xlu0 %573 }
 0x205   :  { %v558_v11 = vpop.permute.xlu1 %557 }
 0x206   :  { %v561_v61 = vsel %vm370_vm2, %v558_v11, %v560_v7  ;;  %v562_v2 = vsel %vm370_vm2, %v560_v7, %v558_v11 }
 0x207   :  { %v570_v14 = vmul.f32 %v566_v44, %v561_v61  ;;  %v571_v19 = vmul.f32 %v567_v50, %v562_v2  ;;  %v717_v2 = vstv %s815_s17 }
 0x208   :  { %v718_v21 = vmul.f32 %v1023_v22, %v717_v2 }
 0x209   :  { %v594_v32 = vadd.f32 %v570_v14, %v554_v18  ;;  %v595_v34 = vadd.f32 %v571_v19, %v555_v10 }
 0x20b   :  { %v598_v39 = vadd.f32 %v594_v32, %v592_v27  ;;  %v599_v42 = vadd.f32 %v595_v34, %v593_v28 }
 0x20d   :  { %v576_v44 = vpop.permute.xlu1 %575  ;;  %v601_v33 = vadd.f32 %v599_v42, %v597_v40  ;;  %v600_v46 = vadd.f32 %v598_v39, %v596_v43  ;;  %v720_v42 = vperm.slane %v718_v21, 0 }
 0x20e   :  { %v577_v29 = vsel %vm397_vm10, %v574_v41, %v576_v44  ;;  %v578_v30 = vsel %vm397_vm10, %v576_v44, %v574_v41 }
 0x20f   :  { %v586_v31 = vmul.f32 %v582_v35, %v577_v29  ;;  %v587_v45 = vmul.f32 %v583_v36, %v578_v30 }
 0x211   :  { %v602_v48 = vadd.f32 %v600_v46, %v586_v31  ;;  %v603_v49 = vadd.f32 %v601_v33, %v587_v45  ;;  %v721_v33 = vperm.slane %v718_v21, 1 }
 0x213   :  { %v606_v50 = vadd.f32 %v605_v47, %v602_v48  ;;  %v607_v52 = vadd.f32 %v605_v47, %v603_v49 }
 0x215   :  { %v1174_v53 = vmax.f32 %v606_v50, 0.0  ;;  %v1176_v54 = vmax.f32 %v607_v52, 0.0 }
 0x217   :  { %613 = vrot.lane.b32.xlu0 %v1176_v54, %s842_s0  ;;  %627 = vrot.lane.b32.xlu1 %v1174_v53, %s845_s7 }
 0x218   :  { %611 = vrot.lane.b32.xlu2 %v1174_v53, %s842_s0  ;;  %s808_s0 = sld [smem:[#allocation3 + $0xb]] }
 0x21e   :  { %v617_v1 = vstv %s808_s0 }
 0x21f   :  { %643 = vrot.lane.b32.xlu0 %v1174_v53, %s848_s10  ;;  %645 = vrot.lane.b32.xlu1 %v1176_v54, %s848_s10  ;;  %s814_s10 = sld [smem:[#allocation3 + $0x11]]  ;;  %v618_v17 = vmul.f32 %v617_v1, %v1052_v51 }
 0x220   :  { %629 = vrot.lane.b32.xlu2 %v1176_v54, %s845_s7  ;;  %s811_s7 = sld [smem:[#allocation3 + $0xe]] }
 0x221   :  { %v620_v23 = vperm.slane %v618_v17, 0  ;;  %v621_v26 = vperm.slane %v618_v17, 1 }
 0x225   :  { %v701_v13 = vstv %s814_s10 }
 0x226   :  { %v665_v62 = vstv %s811_s7  ;;  %v702_v19 = vmul.f32 %v1028_v24, %v701_v13 }
 0x227   :  { %661 = vrot.lane.b32.xlu0 %v1176_v54, %s847_s9  ;;  %679 = vrot.lane.b32.xlu1 %v1174_v53, %s843_s1  ;;  %v666_v10 = vmul.f32 %v1073_v3, %v665_v62 }
 0x228   :  { %659 = vrot.lane.b32.xlu2 %v1174_v53, %s847_s9  ;;  %s813_s9 = sld [smem:[#allocation3 + $0x10]]  ;;  %v704_v37 = vperm.slane %v702_v19, 0  ;;  %v705_v39 = vperm.slane %v702_v19, 1 }
 0x229   :  { %v669_v34 = vperm.slane %v666_v10, 1 }
 0x22e   :  { %v685_v11 = vstv %s813_s9 }
 0x22f   :  { %695 = vrot.lane.b32.xlu0 %v1174_v53, %s844_s6  ;;  %697 = vrot.lane.b32.xlu1 %v1176_v54, %s844_s6  ;;  %s809_s6 = sld [smem:[#allocation3 + $0xc]]  ;;  %v686_v14 = vmul.f32 %v1014_v16, %v685_v11 }
 0x230   :  { %681 = vrot.lane.b32.xlu2 %v1176_v54, %s843_s1  ;;  %s810_s1 = sld [smem:[#allocation3 + $0xd]] }
 0x231   :  { %v688_v36 = vperm.slane %v686_v14, 0  ;;  %v689_v3 = vperm.slane %v686_v14, 1 }
 0x235   :  { %v633_v7 = vstv %s809_s6 }
 0x236   :  { %v649_v60 = vstv %s810_s1  ;;  %v634_v61 = vmul.f32 %v1060_v59, %v633_v7  ;;  %v668_v59 = vperm.slane %v666_v10, 0 }
 0x237   :  { %713 = vrot.lane.b32.xlu0 %v1176_v54, %s846_s8  ;;  %727 = vrot.lane.b32.xlu1 %v1174_v53, %s849_s11  ;;  %v650_v18 = vmul.f32 %v1067_v0, %v649_v60 }
 0x238   :  { %711 = vrot.lane.b32.xlu2 %v1174_v53, %s846_s8  ;;  %s1212_s8 = sld [smem:[#allocation3 + $0x13]]  ;;  %v636_v27 = vperm.slane %v634_v61, 0  ;;  %v637_v28 = vperm.slane %v634_v61, 1 }
 0x239   :  { %v652_v51 = vperm.slane %v650_v18, 0  ;;  %v653_v32 = vperm.slane %v650_v18, 1 }
 0x23e   :  { %v733_v16 = vstv %s1212_s8 }
 0x23f   :  { %v734_v31 = vmul.f32 %v1102_v25, %v733_v16 }
 0x240   :  { %729 = vrot.lane.b32.xlu2 %v1176_v54, %s849_s11  ;;  %s817_s11 = sld [smem:[#allocation3 + $0x14]] }
 0x241   :  { %v737_v18 = vperm.slane %v734_v31, 1 }
 0x272   :  { %v612_v55 = vpop.permute.xlu2 %611 }
 0x27a   :  { %v630_v56 = vpop.permute.xlu2 %629 }
 0x282   :  { %v660_v4 = vpop.permute.xlu2 %659 }
 0x289   :  { %v614_v57 = vpop.permute.xlu0 %613  ;;  %v628_v58 = vpop.permute.xlu1 %627 }
 0x28a   :  { %v682_v63 = vpop.permute.xlu2 %681  ;;  %v615_v43 = vsel %vm204_vm6, %v612_v55, %v614_v57  ;;  %v616_v40 = vsel %vm204_vm6, %v614_v57, %v612_v55  ;;  %v631_v41 = vsel %vm231_vm7, %v628_v58, %v630_v56  ;;  %v632_v44 = vsel %vm231_vm7, %v630_v56, %v628_v58 }
 0x28b   :  { %v624_v49 = vmul.f32 %v620_v23, %v616_v40  ;;  %v625_v50 = vmul.f32 %v621_v26, %v615_v43  ;;  %v640_v52 = vmul.f32 %v636_v27, %v632_v44  ;;  %v641_v55 = vmul.f32 %v637_v28, %v631_v41 }
 0x28d   :  { %v743_v2 = vadd.f32 %v641_v55, %v625_v50 }
 0x291   :  { %v644_v5 = vpop.permute.xlu0 %643  ;;  %v646_v6 = vpop.permute.xlu1 %645 }
 0x292   :  { %v712_v38 = vpop.permute.xlu2 %711  ;;  %v647_v29 = vsel %vm258_vm8, %v644_v5, %v646_v6  ;;  %v648_v30 = vsel %vm258_vm8, %v646_v6, %v644_v5  ;;  %v676_v5 = vmul.f32 %v675_v20, %v1174_v53  ;;  %v736_v53 = vperm.slane %v734_v31, 0 }
 0x293   :  { %v656_v56 = vmul.f32 %v652_v51, %v648_v30  ;;  %v657_v57 = vmul.f32 %v653_v32, %v647_v29 }
 0x299   :  { %v662_v8 = vpop.permute.xlu0 %661  ;;  %v680_v9 = vpop.permute.xlu1 %679 }
 0x29a   :  { %v663_v24 = vsel %vm285_vm9, %v660_v4, %v662_v8  ;;  %v664_v22 = vsel %vm285_vm9, %v662_v8, %v660_v4  ;;  %v683_v47 = vsel %vm316_vm1, %v680_v9, %v682_v63  ;;  %v684_v48 = vsel %vm316_vm1, %v682_v63, %v680_v9  ;;  %v730_v19 = vpop.permute.xlu2 %729 }
 0x29b   :  { %v672_v45 = vmul.f32 %v668_v59, %v664_v22  ;;  %v673_v46 = vmul.f32 %v669_v34, %v663_v24  ;;  %v677_v4 = vmul.f32 %v675_v20, %v1176_v54  ;;  %v692_v6 = vmul.f32 %v688_v36, %v683_v47 }
 0x29c   :  { %v693_v1 = vmul.f32 %v689_v3, %v684_v48  ;;  %v742_v54 = vadd.f32 %v640_v52, %v624_v49  ;;  %v759_v36 = vstv %s817_s11 }
 0x29d   :  { %v744_v63 = vadd.f32 %v672_v45, %v656_v56  ;;  %v745_v8 = vadd.f32 %v673_v46, %v657_v57  ;;  %v746_v10 = vadd.f32 %v692_v6, %v676_v5 }
 0x29e   :  { %v747_v14 = vadd.f32 %v693_v1, %v677_v4 }
 0x29f   :  { %v750_v27 = vadd.f32 %v744_v63, %v742_v54  ;;  %v751_v28 = vadd.f32 %v745_v8, %v743_v2 }
 0x2a1   :  { %v696_v35 = vpop.permute.xlu0 %695  ;;  %v698_v0 = vpop.permute.xlu1 %697 }
 0x2a2   :  { %v699_v58 = vsel %vm343_vm3, %v696_v35, %v698_v0  ;;  %v700_v25 = vsel %vm343_vm3, %v698_v0, %v696_v35 }
 0x2a3   :  { %v708_v62 = vmul.f32 %v704_v37, %v699_v58  ;;  %v709_v11 = vmul.f32 %v705_v39, %v700_v25 }
 0x2a9   :  { %v714_v7 = vpop.permute.xlu0 %713  ;;  %v728_v61 = vpop.permute.xlu1 %727 }
 0x2aa   :  { %v715_v9 = vsel %vm370_vm2, %v712_v38, %v714_v7  ;;  %v716_v60 = vsel %vm370_vm2, %v714_v7, %v712_v38  ;;  %v731_v23 = vsel %vm397_vm10, %v728_v61, %v730_v19  ;;  %v732_v26 = vsel %vm397_vm10, %v730_v19, %v728_v61 }
 0x2ab   :  { %v724_v13 = vmul.f32 %v720_v42, %v715_v9  ;;  %v725_v17 = vmul.f32 %v721_v33, %v716_v60  ;;  %v740_v59 = vmul.f32 %v736_v53, %v731_v23  ;;  %v741_v34 = vmul.f32 %v737_v18, %v732_v26 }
 0x2ad   :  { %v748_v20 = vadd.f32 %v724_v13, %v708_v62  ;;  %v749_v21 = vadd.f32 %v725_v17, %v709_v11 }
 0x2af   :  { %v752_v51 = vadd.f32 %v748_v20, %v746_v10  ;;  %v753_v32 = vadd.f32 %v749_v21, %v747_v14 }
 0x2b1   :  { %v754_v35 = vadd.f32 %v752_v51, %v750_v27  ;;  %v755_v0 = vadd.f32 %v753_v32, %v751_v28 }
 0x2b3   :  { %v756_v3 = vadd.f32 %v754_v35, %v740_v59  ;;  %v757_v37 = vadd.f32 %v755_v0, %v741_v34 }
 0x2b5   :  { %v760_v16 = vadd.f32 %v759_v36, %v756_v3  ;;  %v761_v38 = vadd.f32 %v759_v36, %v757_v37 }
 0x2b7   :  { %v763_v24 = vmax.f32 %v761_v38, 0.0  ;;  %v762_v22 = vmax.f32 %v760_v16, 0.0 }
 0x2b9   :  { %v766_v39 = vrot.slane %v763_v24, 7 }
 0x2bb   :  { %v767_v15 = vsel %vm414_vm5, %v762_v22, %v766_v39  ;;  %v768_v42 = vsel %vm416_vm4, %v762_v22, %v766_v39 }
 0x2bc   :  { %v769_v43 = vrot.slane %v768_v42, 1  ;;  %776 = vst.msk [vmem:[%s1271_s4] sm:$0x3] %vm774_vm11, %v767_v15 }
 0x2be   :  { %777 = vst.msk [vmem:[%s1271_s4 + $0x2] sm:$0x3] %vm774_vm11, %v769_v43 }
 0x2bf   :  { %782 = vsyncpa [#allocation4], 1 }

</bundles_post_ra>
